<compile_context>
chip_gen: v6e
topology: v6e:2x2x1
jax: 0.10.0
libtpu: 0.0.40
codegen_flags: <defaults>
</compile_context>

<pallas_src>
import functools

import jax
import jax.numpy as jnp
from jax.experimental import pallas as pl
from jax.experimental.pallas import tpu as pltpu


# ----------------------------- Pallas kernel -------------------------------

def _drsn_kernel(params_ref, x_ref, o_ref, *, hw_true, hw_padded):
    # params_ref: SMEM (8,) f32 folded scalars (scalar-prefetched)
    #   [0] conv1 scale   [1] conv1 bias
    #   [2] conv2 scale   [3] conv2 bias
    #   [4] fc1 scale     [5] fc1 bias   (Linear(1,1) + folded BatchNorm1d)
    #   [6] fc2 scale     [7] fc2 bias   (Linear(1,1))
    # x_ref / o_ref: VMEM (TN, HWp) f32 batch tile
    s1 = params_ref[0]
    b1 = params_ref[1]
    s2 = params_ref[2]
    b2 = params_ref[3]
    fw1 = params_ref[4]
    fb1 = params_ref[5]
    fw2 = params_ref[6]
    fb2 = params_ref[7]

    x = x_ref[...]                                    # identity, (TN, HWp)

    # conv1 (1x1, C=1) + BN (folded) + ReLU
    y = jnp.maximum(x * s1 + b1, 0.0)
    # conv2 (1x1, C=1) + BN (folded) + ReLU
    y = jnp.maximum(y * s2 + b2, 0.0)

    # ---- Shrinkage (y >= 0, so abs/sign are free) ----
    if hw_padded != hw_true:
        # exclude pad lanes from the global-average-pool
        lane = jax.lax.broadcasted_iota(jnp.int32, y.shape, 1)
        y_for_sum = jnp.where(lane < hw_true, y, 0.0)
    else:
        y_for_sum = y
    avg = jnp.sum(y_for_sum, axis=-1, keepdims=True) * (1.0 / hw_true)  # (TN, 1)

    # fc: Linear(1,1) -> BN1d (folded) -> ReLU -> Linear(1,1) -> Sigmoid
    h = jnp.maximum(avg * fw1 + fb1, 0.0)
    gate = jax.nn.sigmoid(h * fw2 + fb2)              # (TN, 1)
    thresh = avg * gate                               # (TN, 1), >= 0

    # soft threshold with y >= 0:  sign(y)*max(|y|-thresh, 0) == max(y-thresh, 0)
    shrunk = jnp.maximum(y - thresh, 0.0)

    # residual add + ReLU
    o_ref[...] = jnp.maximum(x + shrunk, 0.0)


# ------------------------------ wrapper -------------------------------------

def drsn_block(x_nchw, params):
    """x_nchw: (N, 1, H, W) float32; params: (8,) float32 folded scalars."""
    N, C, H, W = x_nchw.shape
    assert C == 1, "DRSNBlock/Shrinkage as written only supports C == 1"
    HW = H * W
    HWp = ((HW + 127) // 128) * 128                    # lane-dense, 128-aligned

    x2d = x_nchw.reshape(N, HW).astype(jnp.float32)

    # Batch tile: multiple of 8 sublanes, capped so double-buffered in+out
    # tiles stay well under the scoped-VMEM default on every chip.
    budget_rows = max(8, (4 * 1024 * 1024) // (HWp * 4))   # ~4 MiB per tile
    TN = min(512, budget_rows, ((N + 7) // 8) * 8)
    TN = max(8, (TN // 8) * 8)
    Np = ((N + TN - 1) // TN) * TN

    if Np != N or HWp != HW:
        x2d = jnp.pad(x2d, ((0, Np - N), (0, HWp - HW)))

    kernel = functools.partial(_drsn_kernel, hw_true=HW, hw_padded=HWp)

    grid_spec = pltpu.PrefetchScalarGridSpec(
        num_scalar_prefetch=1,                          # params -> SMEM
        grid=(Np // TN,),
        in_specs=[pl.BlockSpec((TN, HWp), lambda i, p: (i, 0))],
        out_specs=pl.BlockSpec((TN, HWp), lambda i, p: (i, 0)),
    )

    out2d = pl.pallas_call(
        kernel,
        out_shape=jax.ShapeDtypeStruct((Np, HWp), jnp.float32),
        grid_spec=grid_spec,
        compiler_params=pltpu.CompilerParams(
            dimension_semantics=("parallel",),          # megacore / 2-TC sharding
            vmem_limit_bytes=32 * 1024 * 1024,
        ),
    )(params, x2d)

    out2d = out2d[:N, :HW]
    return out2d.reshape(N, C, H, W)


# ------------------------ parameter construction ----------------------------

def make_params(key):
    """Deterministic synthetic parameters matching the PyTorch module shapes,
    with inference-mode BatchNorm folded into scale/bias scalars."""
    eps = 1e-5
    ks = jax.random.split(key, 8)

    # conv1: Conv2d(1, 1, 1) -> weight (1,1,1,1), bias (1,)
    w1 = jax.random.normal(ks[0], ()) * 0.5
    c1b = jax.random.normal(ks[1], ()) * 0.1
    # conv2
    w2 = jax.random.normal(ks[2], ()) * 0.5
    c2b = jax.random.normal(ks[3], ()) * 0.1
    # BatchNorm2d defaults: gamma=1, beta=0, running_mean=0, running_var=1
    g, b, rm, rv = 1.0, 0.0, 0.0, 1.0
    bn_s = g / jnp.sqrt(rv + eps)
    scale1 = w1 * bn_s
    bias1 = (c1b - rm) * bn_s + b
    scale2 = w2 * bn_s
    bias2 = (c2b - rm) * bn_s + b

    # Shrinkage fc: Linear(1,1) -> BatchNorm1d(1) -> ReLU -> Linear(1,1) -> Sigmoid
    fcw1 = jax.random.normal(ks[4], ()) * 0.5
    fcb1 = jax.random.normal(ks[5], ()) * 0.1
    fcw2 = jax.random.normal(ks[6], ()) * 0.5
    fcb2 = jax.random.normal(ks[7], ()) * 0.1
    # fold BatchNorm1d (inference, default stats) into the first linear
    bn1d_s = 1.0 / jnp.sqrt(1.0 + eps)
    fc1_scale = fcw1 * bn1d_s
    fc1_bias = fcb1 * bn1d_s

    return jnp.stack(
        [scale1, bias1, scale2, bias2, fc1_scale, fc1_bias, fcw2, fcb2]
    ).astype(jnp.float32)


# ------------------------- pure-JAX reference --------------------------------

def drsn_reference(x_nchw, params):
    # Mirrors the PyTorch forward literally (abs / sign / soft-threshold).
    s1, b1, s2, b2, fw1, fb1, fw2, fb2 = [params[i] for i in range(8)]
    x = x_nchw.astype(jnp.float32)
    y = jnp.maximum(x * s1 + b1, 0.0)
    y = jnp.maximum(y * s2 + b2, 0.0)
    y_abs = jnp.abs(y)
    avg = jnp.mean(y_abs, axis=(2, 3), keepdims=True)          # (N,1,1,1)
    h = jnp.maximum(avg * fw1 + fb1, 0.0)
    gate = jax.nn.sigmoid(h * fw2 + fb2)
    thresh = avg * gate
    shrunk = jnp.sign(y) * jnp.maximum(y_abs - thresh, 0.0)
    return jnp.maximum(x + shrunk, 0.0)


# --------------------------------- main --------------------------------------

if __name__ == "__main__":
    key = jax.random.PRNGKey(0)
    kx, kp = jax.random.split(key)

    N, C, H, W = 2, 1, 16, 16            # NCHW; C must be 1 (Shrinkage(channel=1))
    x = jax.random.normal(kx, (N, C, H, W), dtype=jnp.float32)
    params = make_params(kp)

    out = drsn_block(x, params)
    out = jax.block_until_ready(out)

    ref = drsn_reference(x, params)
    assert out.shape == (N, C, H, W)
    assert jnp.allclose(out, ref, atol=1e-5, rtol=1e-5), "mismatch vs reference"

    print("KERNEL_OK")
</pallas_src>

<mosaic_0001>
module attributes {stable_mosaic.version = 11 : i64} {
  func.func @_drsn_kernel(%arg0: i32, %arg1: memref<8xf32, #tpu.memory_space<smem>>, %arg2: memref<8x256xf32, #tpu.memory_space<vmem>>, %arg3: memref<8x256xf32, #tpu.memory_space<vmem>>) attributes {dimension_semantics = [#tpu.dimension_semantics<parallel>], iteration_bounds = array<i64: 1>, scalar_prefetch = 1 : i64, scratch_operands = 0 : i64, tpu.core_type = #tpu.core_type<tc>, window_params = [{transform_indices = @transform_0, window_bounds = array<i64: 8, 256>}, {transform_indices = @transform_1, window_bounds = array<i64: 8, 256>}]} {
    %c0 = arith.constant 0 : index
    %0 = memref.load %arg1[%c0] : memref<8xf32, #tpu.memory_space<smem>>
    %c1 = arith.constant 1 : index
    %1 = memref.load %arg1[%c1] : memref<8xf32, #tpu.memory_space<smem>>
    %c2 = arith.constant 2 : index
    %2 = memref.load %arg1[%c2] : memref<8xf32, #tpu.memory_space<smem>>
    %c3 = arith.constant 3 : index
    %3 = memref.load %arg1[%c3] : memref<8xf32, #tpu.memory_space<smem>>
    %c4 = arith.constant 4 : index
    %4 = memref.load %arg1[%c4] : memref<8xf32, #tpu.memory_space<smem>>
    %c5 = arith.constant 5 : index
    %5 = memref.load %arg1[%c5] : memref<8xf32, #tpu.memory_space<smem>>
    %c6 = arith.constant 6 : index
    %6 = memref.load %arg1[%c6] : memref<8xf32, #tpu.memory_space<smem>>
    %c7 = arith.constant 7 : index
    %7 = memref.load %arg1[%c7] : memref<8xf32, #tpu.memory_space<smem>>
    %c0_0 = arith.constant 0 : index
    %c0_1 = arith.constant 0 : index
    %8 = vector.load %arg2[%c0_0, %c0_1] : memref<8x256xf32, #tpu.memory_space<vmem>>, vector<8x256xf32>
    %9 = vector.broadcast %0 : f32 to vector<8x256xf32>
    %10 = arith.mulf %8, %9 : vector<8x256xf32>
    %11 = vector.broadcast %1 : f32 to vector<8x256xf32>
    %12 = arith.addf %10, %11 : vector<8x256xf32>
    %cst = arith.constant 0.000000e+00 : f32
    %13 = vector.broadcast %cst : f32 to vector<8x256xf32>
    %14 = arith.maximumf %12, %13 : vector<8x256xf32>
    %15 = vector.broadcast %2 : f32 to vector<8x256xf32>
    %16 = arith.mulf %14, %15 : vector<8x256xf32>
    %17 = vector.broadcast %3 : f32 to vector<8x256xf32>
    %18 = arith.addf %16, %17 : vector<8x256xf32>
    %cst_2 = arith.constant 0.000000e+00 : f32
    %19 = vector.broadcast %cst_2 : f32 to vector<8x256xf32>
    %20 = arith.maximumf %18, %19 : vector<8x256xf32>
    %cst_3 = arith.constant dense<0.000000e+00> : vector<8xf32>
    %21 = vector.multi_reduction <add>, %20, %cst_3 [1] : vector<8x256xf32> to vector<8xf32>
    %22 = vector.shape_cast %21 : vector<8xf32> to vector<8x1xf32>
    %cst_4 = arith.constant 3.906250e-03 : f32
    %23 = vector.broadcast %cst_4 : f32 to vector<8x1xf32>
    %24 = arith.mulf %22, %23 : vector<8x1xf32>
    %25 = vector.broadcast %4 : f32 to vector<8x1xf32>
    %26 = arith.mulf %24, %25 : vector<8x1xf32>
    %27 = vector.broadcast %5 : f32 to vector<8x1xf32>
    %28 = arith.addf %26, %27 : vector<8x1xf32>
    %cst_5 = arith.constant 0.000000e+00 : f32
    %29 = vector.broadcast %cst_5 : f32 to vector<8x1xf32>
    %30 = arith.maximumf %28, %29 : vector<8x1xf32>
    %31 = vector.broadcast %6 : f32 to vector<8x1xf32>
    %32 = arith.mulf %30, %31 : vector<8x1xf32>
    %33 = vector.broadcast %7 : f32 to vector<8x1xf32>
    %34 = arith.addf %32, %33 : vector<8x1xf32>
    %35 = arith.negf %34 : vector<8x1xf32>
    %36 = math.exp %35 : vector<8x1xf32>
    %cst_6 = arith.constant 1.000000e+00 : f32
    %37 = vector.broadcast %cst_6 : f32 to vector<8x1xf32>
    %38 = arith.addf %37, %36 : vector<8x1xf32>
    %39 = arith.divf %37, %38 : vector<8x1xf32>
    %40 = arith.mulf %24, %39 : vector<8x1xf32>
    %41 = vector.broadcast %40 : vector<8x1xf32> to vector<8x256xf32>
    %42 = arith.subf %20, %41 : vector<8x256xf32>
    %cst_7 = arith.constant 0.000000e+00 : f32
    %43 = vector.broadcast %cst_7 : f32 to vector<8x256xf32>
    %44 = arith.maximumf %42, %43 : vector<8x256xf32>
    %45 = arith.addf %8, %44 : vector<8x256xf32>
    %cst_8 = arith.constant 0.000000e+00 : f32
    %46 = vector.broadcast %cst_8 : f32 to vector<8x256xf32>
    %47 = arith.maximumf %45, %46 : vector<8x256xf32>
    %c0_9 = arith.constant 0 : index
    %c0_10 = arith.constant 0 : index
    %48 = vector.load %arg3[%c0_9, %c0_10] : memref<8x256xf32, #tpu.memory_space<vmem>>, vector<8x256xf32>
    tpu.vector_store %arg3[%c0_9, %c0_10], %47 {strides = array<i32>} : memref<8x256xf32, #tpu.memory_space<vmem>>, vector<8x256xf32>,
    return
  }
  func.func @transform_0(%arg0: i32, %arg1: memref<8xf32, #tpu.memory_space<smem>>) -> (i32, i32) {
    %c0_i32 = arith.constant 0 : i32
    %c0_i32_0 = arith.constant 0 : i32
    return %arg0, %c0_i32 : i32, i32
  }
  func.func @transform_1(%arg0: i32, %arg1: memref<8xf32, #tpu.memory_space<smem>>) -> (i32, i32) {
    %c0_i32 = arith.constant 0 : i32
    %c0_i32_0 = arith.constant 0 : i32
    return %arg0, %c0_i32 : i32, i32
  }
}

</mosaic_0001>

<bundles_post_ra>
// kernel: tpu_custom_call.1
= control target key start
LH: loop header
LB: loop body
LE: loop exit
PB: predicated region body
PF: predicated region fallthrough
CT: control target
= control target key end

     0   :  { %s166_s9 = smov [#allocation3]   ;;  %s193_s0 = inlined_call_operand.hbm [shape: f32[8], index: 0, kind: input, shape index: {}]   ;;  %s194_s1 = inlined_call_operand.hbm [shape: f32[8,256], index: 1, kind: input, shape index: {}]   ;;  %s195_s2 = inlined_call_operand.hbm [shape: f32[8,256], index: 2, kind: output, shape index: {}]  }
   0x1   :  { %8 = dma.hbm_to_smem %s193_s0, 16, %s166_s9, [#allocation2] }
   0x2   :  { %160 = dma.done.wait [#allocation2], 16 }
   0x3   :  { %161 = vsyncadd [#allocation2], 4294967280 }
   0x4   :  { %10 = sfence }
   0x5   :  { %11 = vsyncpa [#allocation5], 0 }
   0x6   :  { %12 = vsyncpa [#allocation6], 0  ;;  %s167_s12 = smov [#allocation4]  }
   0x7   :  { %s19_s13 = sshll.u32 %s167_s12, 4  ;;  %s20_s13 = int_to_ptr.vmem [resolvable:$true] %s19_s13 }
   0x8   :  { %s128_s14 = scalar_lea.vmem %s20_s13, 256  ;;  %p133_p1 = scmp.lt.s32.totalorder %s20_s13, %s20_s13 }
   0x9   :  { %p129_p0 = scmp.ne.s32.totalorder %s20_s13, %s128_s14  ;;  %p134_p2 = scmp.lt.s32.totalorder %s128_s14, %s128_s14 }
   0xb   :  { %p135_p3 = por %p134_p2, %p133_p1 }
   0xd   :  { %p136_p4 = pnand %p135_p3, %p129_p0 }
   0xf   :  { %139 = shalt.err (!%p136_p4)
}
  0x10   :  { %22 = dma.hbm_to_vmem [thread:$0]  %s194_s1, 256, %s20_s13, [#allocation5]  }
  0x11   :  { %162 = dma.done.wait [#allocation5], 256  }
  0x12   :  { %163 = vsyncadd [#allocation5], 4294967040  ;;  %s26_s0 = sld [smem:[#allocation3]]  ;;  %v34_v0 = vld [vmem:[#allocation4] sm:$0xff]  ;;  %v35_v1 = vld [vmem:[#allocation4 + $0x8] sm:$0xff]  ;;  %s168_s23 = smov [#allocation7]  }
  0x13   :  { %s97_s17 = sld [smem:[#allocation3 + $0x1]]  ;;  %s88_s24 = sshll.u32 %s168_s23, 4  ;;  %s89_s24 = int_to_ptr.vmem [resolvable:$true] %s88_s24 }
  0x14   :  { %s98_s18 = sld [smem:[#allocation3 + $0x2]]  ;;  %s140_s25 = scalar_lea.vmem %s89_s24, 256 }
  0x15   :  { %s99_s19 = sld [smem:[#allocation3 + $0x3]]  ;;  %p141_p5 = scmp.ne.s32.totalorder %s89_s24, %s140_s25 }
  0x16   :  { %s100_s1 = sld [smem:[#allocation3 + $0x4]]  ;;  %p145_p6 = scmp.lt.s32.totalorder %s89_s24, %s89_s24 }
  0x17   :  { %s101_s20 = sld [smem:[#allocation3 + $0x5]]  ;;  %p146_p7 = scmp.lt.s32.totalorder %s140_s25, %s140_s25 }
  0x18   :  { %v36_v2 = vstv %s26_s0  ;;  %s102_s21 = sld [smem:[#allocation3 + $0x6]] }
  0x19   :  { %v37_v3 = vmul.f32 %v36_v2, %v34_v0  ;;  %v38_v4 = vmul.f32 %v36_v2, %v35_v1  ;;  %v39_v5 = vstv %s97_s17  ;;  %s103_s22 = sld [smem:[#allocation3 + $0x7]]  ;;  %p147_p8 = por %p146_p7, %p145_p6 }
  0x1a   :  { %v44_v8 = vstv %s98_s18 }
  0x1b   :  { %v40_v6 = vadd.f32 %v39_v5, %v37_v3  ;;  %v41_v7 = vadd.f32 %v39_v5, %v38_v4  ;;  %v47_v11 = vstv %s99_s19  ;;  %p148_p9 = pnand %p147_p8, %p141_p5 }
  0x1c   :  { %v56_v20 = vstv %s100_s1 }
  0x1d   :  { %v42_v9 = vmax.f32 %v40_v6, 0.0  ;;  %v43_v10 = vmax.f32 %v41_v7, 0.0  ;;  %v58_v22 = vstv %s101_s20 }
  0x1e   :  { %v61_v25 = vstv %s102_s21 }
  0x1f   :  { %v45_v12 = vmul.f32 %v44_v8, %v42_v9  ;;  %v46_v13 = vmul.f32 %v44_v8, %v43_v10  ;;  %v63_v27 = vstv %s103_s22 }
  0x21   :  { %v48_v14 = vadd.f32 %v47_v11, %v45_v12  ;;  %v49_v15 = vadd.f32 %v47_v11, %v46_v13 }
  0x23   :  { %v50_v16 = vmax.f32 %v48_v14, 0.0  ;;  %v51_v17 = vmax.f32 %v49_v15, 0.0 }
  0x25   :  { %v52_v18 = vadd.f32 %v51_v17, %v50_v16 }
  0x27   :  { %53 = vadd.xlane.f32.xlu0 %v52_v18 }
  0xb0   :  { %v54_v19 = vpop.xlane.xlu0 %53 }
  0xb1   :  { %v55_v21 = vmul.f32 0.00390625, %v54_v19 }
  0xb3   :  { %v57_v23 = vmul.f32 %v56_v20, %v55_v21 }
  0xb5   :  { %v59_v24 = vadd.f32 %v58_v22, %v57_v23 }
  0xb7   :  { %v60_v26 = vmax.f32 %v59_v24, 0.0 }
  0xb9   :  { %v62_v28 = vmul.f32 %v61_v25, %v60_v26 }
  0xbb   :  { %v64_v29 = vadd.f32 %v63_v27, %v62_v28 }
  0xbd   :  { %v104_v30 = vmul.f32 -1.442695, %v64_v29 }
  0xbf   :  { %108 = vpow2.f32 %v104_v30 }
  0xcc   :  { %v109_v31 = vpop.eup %108 }
  0xcd   :  { %v68_v32 = vadd.f32 1.0, %v109_v31 }
  0xcf   :  { %110 = vrcp.f32 %v68_v32 }
  0xdc   :  { %v111_v33 = vpop.eup %110 }
  0xdd   :  { %v71_v34 = vmul.f32 %v111_v33, %v55_v21 }
  0xdf   :  { %v72_v35 = vsub.f32 %v50_v16, %v71_v34  ;;  %v73_v36 = vsub.f32 %v51_v17, %v71_v34 }
  0xe1   :  { %v74_v37 = vmax.f32 %v72_v35, 0.0  ;;  %v75_v38 = vmax.f32 %v73_v36, 0.0 }
  0xe3   :  { %v76_v39 = vadd.f32 %v74_v37, %v34_v0  ;;  %v77_v40 = vadd.f32 %v75_v38, %v35_v1 }
  0xe5   :  { %v78_v41 = vmax.f32 %v76_v39, 0.0  ;;  %v79_v42 = vmax.f32 %v77_v40, 0.0 }
  0xe7   :  { %80 = vst [vmem:[#allocation7] sm:$0xff] %v78_v41  ;;  %81 = vst [vmem:[#allocation7 + $0x8] sm:$0xff] %v79_v42 }
  0xe8   :  { %151 = shalt.err (!%p148_p9)
}
  0xe9   :  { %91 = dma.vmem_to_hbm [thread:$0]  %s89_s24, 256, %s195_s2, [#allocation6]  }
  0xea   :  { %164 = dma.done.wait [#allocation6], 256  }
  0xeb   :  { %165 = vsyncadd [#allocation6], 4294967040 }
  0xec   :  { %95 = vsyncpa [#allocation5], 1 }
  0xed   :  { %96 = vsyncpa [#allocation6], 1 }

</bundles_post_ra>
